<compile_context>
chip_gen: v7x
topology: tpu7x:2x2x1
jax: 0.10.0
libtpu: 0.0.40
codegen_flags: <defaults>
</compile_context>

<pallas_src>
import functools

import jax
import jax.numpy as jnp
from jax import lax
from jax.experimental import pallas as pl
from jax.experimental.pallas import tpu as pltpu


def _round_up(x, m):
    return ((x + m - 1) // m) * m


def make_normmlp_kernel(out_true, eps=1e-5):
    """out_true: un-padded output feature count (LayerNorm reduction width)."""

    def kernel(x_ref, w_ref, b_ref, g_ref, beta_ref, o_ref):
        # 1) ReLU on the input activations (VPU), cast to the matmul dtype.
        x = jnp.maximum(x_ref[...], 0.0).astype(w_ref.dtype)

        # 2) Linear: x @ W + b  (MXU, f32 accumulate).  Padded W cols / bias
        #    entries are zero, so padded h columns are exactly zero.
        h = jnp.dot(x, w_ref[...], preferred_element_type=jnp.float32)
        h = h + b_ref[...].astype(jnp.float32)

        out_pad = h.shape[-1]
        if out_pad == out_true:
            # No padding: plain two-pass LayerNorm statistics.
            mean = jnp.mean(h, axis=-1, keepdims=True)
            centered = h - mean
            var = jnp.mean(centered * centered, axis=-1, keepdims=True)
        else:
            # Padded lanes: sums over all lanes are fine for the mean because
            # padded h columns are zero, but the centered values there are
            # -mean, so mask them out of the variance and divide by out_true.
            inv_n = 1.0 / float(out_true)
            mean = jnp.sum(h, axis=-1, keepdims=True) * inv_n
            centered = h - mean
            col = lax.broadcasted_iota(jnp.int32, h.shape, 1)
            cm = jnp.where(col < out_true, centered, 0.0)
            var = jnp.sum(cm * cm, axis=-1, keepdims=True) * inv_n

        inv = lax.rsqrt(var + eps)

        # 3) Affine (gamma, beta); padded output lanes are garbage but get
        #    sliced off in the wrapper.
        o_ref[...] = (centered * inv * g_ref[...].astype(jnp.float32)
                      + beta_ref[...].astype(jnp.float32)).astype(o_ref.dtype)

    return kernel


def normmlp_prepare(weight, bias, gamma, beta, compute_dtype=jnp.float32):
    """One-time parameter prep (do NOT call per forward pass).

    weight: (out, in) as in nn.Linear; bias/gamma/beta: (out,).
    Returns params with the weight pre-transposed to (in, out_pad) and the
    feature dimension zero-padded to a multiple of 128 (lane-dense stores).
    """
    out_size, in_size = weight.shape
    out_pad = _round_up(out_size, 128)
    pad = out_pad - out_size

    w_t = weight.T.astype(compute_dtype)                    # (in, out)
    if pad:
        w_t = jnp.pad(w_t, ((0, 0), (0, pad)))
        bias = jnp.pad(bias, (0, pad))
        gamma = jnp.pad(gamma, (0, pad))
        beta = jnp.pad(beta, (0, pad))

    return {
        "w_t": w_t,                                          # (in, out_pad)
        "b": bias.astype(jnp.float32).reshape(1, out_pad),
        "g": gamma.astype(jnp.float32).reshape(1, out_pad),
        "beta": beta.astype(jnp.float32).reshape(1, out_pad),
        "out_size": out_size,
        "in_size": in_size,
    }


@functools.partial(jax.jit, static_argnames=("tm_target",))
def _normmlp_padded(x_pad, w_t, b, g, beta, *, tm_target):
    # (kept jittable; all shape logic is resolved in normmlp_apply)
    return x_pad  # placeholder never used; real call is built in normmlp_apply


def normmlp_apply(x, params, tm_target=256):
    """x: (B, in_size) -> (B, out_size), same semantics as the PyTorch module."""
    B, in_size = x.shape
    assert in_size == params["in_size"]
    w_t = params["w_t"]
    out_pad = w_t.shape[1]
    out_size = params["out_size"]

    # Batch tile: multiple of 8 (f32 sublane), target ~tm_target rows.
    tm = min(tm_target, _round_up(B, 8))
    tm = _round_up(tm, 8)
    b_pad = _round_up(B, tm)
    if b_pad != B:
        x = jnp.pad(x, ((0, b_pad - B), (0, 0)))
    grid = (pl.cdiv(b_pad, tm),)

    # VMEM budget: resident weight + double-buffered x/out tiles + slack.
    w_bytes = in_size * out_pad * jnp.dtype(w_t.dtype).itemsize
    tile_bytes = tm * (in_size + out_pad) * 4
    vmem_limit = int(min(max(w_bytes + 4 * tile_bytes + (8 << 20), 32 << 20),
                         64 << 20))

    kernel = make_normmlp_kernel(out_size)

    out = pl.pallas_call(
        kernel,
        out_shape=jax.ShapeDtypeStruct((b_pad, out_pad), x.dtype),
        grid_spec=pltpu.PrefetchScalarGridSpec(
            num_scalar_prefetch=0,
            grid=grid,
            in_specs=[
                pl.BlockSpec((tm, in_size), lambda i: (i, 0)),       # x tile
                pl.BlockSpec((in_size, out_pad), lambda i: (0, 0)),  # W resident
                pl.BlockSpec((1, out_pad), lambda i: (0, 0)),        # bias
                pl.BlockSpec((1, out_pad), lambda i: (0, 0)),        # gamma
                pl.BlockSpec((1, out_pad), lambda i: (0, 0)),        # beta
            ],
            out_specs=pl.BlockSpec((tm, out_pad), lambda i: (i, 0)),
        ),
        compiler_params=pltpu.CompilerParams(
            dimension_semantics=("parallel",),
            vmem_limit_bytes=vmem_limit,
        ),
    )(x, w_t, params["b"], params["g"], params["beta"])

    return out[:B, :out_size]


# TODO(synk): for very large in_size, add a trailing "arbitrary" K grid axis
# with an f32 VMEM accumulator and run bias+LayerNorm only in the k==last
# epilogue; not needed at these sizes since the full weight fits VMEM.


if __name__ == "__main__":
    key = jax.random.PRNGKey(0)
    k_x, k_w, k_b = jax.random.split(key, 3)

    batch = 8
    input_size = 32
    output_size = 64

    # Deterministic synthetic parameters (nn.Linear-like init scale)
    x = jax.random.normal(k_x, (batch, input_size), dtype=jnp.float32)
    bound = 1.0 / (input_size ** 0.5)
    weight = jax.random.uniform(
        k_w, (output_size, input_size), minval=-bound, maxval=bound,
        dtype=jnp.float32)
    bias = jax.random.uniform(
        k_b, (output_size,), minval=-bound, maxval=bound, dtype=jnp.float32)
    gamma = jnp.ones((output_size,), dtype=jnp.float32)   # LayerNorm weight
    beta = jnp.zeros((output_size,), dtype=jnp.float32)   # LayerNorm bias

    # One-time parameter prep (transpose + lane-pad), then the kernel call.
    params = normmlp_prepare(weight, bias, gamma, beta)
    out = normmlp_apply(x, params)
    out = jax.block_until_ready(out)

    # Reference check in plain JAX (same semantics as the PyTorch module)
    h_ref = jnp.maximum(x, 0.0) @ weight.T + bias
    mu = jnp.mean(h_ref, axis=-1, keepdims=True)
    va = jnp.mean((h_ref - mu) ** 2, axis=-1, keepdims=True)
    ref = (h_ref - mu) / jnp.sqrt(va + 1e-5) * gamma + beta

    assert out.shape == (batch, output_size)
    assert jnp.allclose(out, ref, atol=2e-5, rtol=2e-5), "mismatch vs reference"

    print("KERNEL_OK")
</pallas_src>

<mosaic_0001>
module attributes {stable_mosaic.version = 11 : i64} {
  func.func @kernel(%arg0: i32, %arg1: memref<8x32xf32, #tpu.memory_space<vmem>>, %arg2: memref<32x128xf32, #tpu.memory_space<vmem>>, %arg3: memref<1x128xf32, #tpu.memory_space<vmem>>, %arg4: memref<1x128xf32, #tpu.memory_space<vmem>>, %arg5: memref<1x128xf32, #tpu.memory_space<vmem>>, %arg6: memref<8x128xf32, #tpu.memory_space<vmem>>) attributes {dimension_semantics = [#tpu.dimension_semantics<parallel>], iteration_bounds = array<i64: 1>, scalar_prefetch = 0 : i64, scratch_operands = 0 : i64, tpu.core_type = #tpu.core_type<tc>, window_params = [{transform_indices = @transform_0, window_bounds = array<i64: 8, 32>}, {pipeline_mode = #tpu.pipeline_mode<synchronous>, transform_indices = @transform_1, window_bounds = array<i64: 32, 128>}, {pipeline_mode = #tpu.pipeline_mode<synchronous>, transform_indices = @transform_2, window_bounds = array<i64: 1, 128>}, {pipeline_mode = #tpu.pipeline_mode<synchronous>, transform_indices = @transform_3, window_bounds = array<i64: 1, 128>}, {pipeline_mode = #tpu.pipeline_mode<synchronous>, transform_indices = @transform_4, window_bounds = array<i64: 1, 128>}, {transform_indices = @transform_5, window_bounds = array<i64: 8, 128>}]} {
    %c0 = arith.constant 0 : index
    %c0_0 = arith.constant 0 : index
    %0 = vector.load %arg1[%c0, %c0_0] : memref<8x32xf32, #tpu.memory_space<vmem>>, vector<8x32xf32>
    %cst = arith.constant 0.000000e+00 : f32
    %1 = vector.broadcast %cst : f32 to vector<8x32xf32>
    %2 = arith.maximumf %0, %1 : vector<8x32xf32>
    %c0_1 = arith.constant 0 : index
    %c0_2 = arith.constant 0 : index
    %3 = vector.load %arg2[%c0_1, %c0_2] : memref<32x128xf32, #tpu.memory_space<vmem>>, vector<32x128xf32>
    %cst_3 = arith.constant dense<0.000000e+00> : vector<8x128xf32>
    %4 = tpu.matmul %2, %3, %cst_3 {dimension_numbers = #tpu.dot_dimension_numbers<[1], [0], [0], [1], [0, 0, 1, 1], [], []>} : vector<8x32xf32>, vector<32x128xf32>, vector<8x128xf32> -> vector<8x128xf32>
    %c0_4 = arith.constant 0 : index
    %c0_5 = arith.constant 0 : index
    %5 = vector.load %arg3[%c0_4, %c0_5] : memref<1x128xf32, #tpu.memory_space<vmem>>, vector<1x128xf32>
    %6 = vector.broadcast %5 : vector<1x128xf32> to vector<8x128xf32>
    %7 = arith.addf %4, %6 : vector<8x128xf32>
    %cst_6 = arith.constant dense<0.000000e+00> : vector<8xf32>
    %8 = vector.multi_reduction <add>, %7, %cst_6 [1] : vector<8x128xf32> to vector<8xf32>
    %9 = vector.shape_cast %8 : vector<8xf32> to vector<8x1xf32>
    %cst_7 = arith.constant 1.562500e-02 : f32
    %10 = vector.broadcast %cst_7 : f32 to vector<8x1xf32>
    %11 = arith.mulf %9, %10 : vector<8x1xf32>
    %12 = vector.broadcast %11 : vector<8x1xf32> to vector<8x128xf32>
    %13 = arith.subf %7, %12 : vector<8x128xf32>
    %14 = tpu.iota {dimensions = array<i32: 1>} : vector<8x128xi32>
    %c64_i32 = arith.constant 64 : i32
    %15 = vector.broadcast %c64_i32 : i32 to vector<8x128xi32>
    %16 = arith.cmpi slt, %14, %15 : vector<8x128xi32>
    %cst_8 = arith.constant 0.000000e+00 : f32
    %17 = vector.broadcast %cst_8 : f32 to vector<8x128xf32>
    %18 = arith.select %16, %13, %17 : vector<8x128xi1>, vector<8x128xf32>
    %19 = arith.mulf %18, %18 : vector<8x128xf32>
    %cst_9 = arith.constant dense<0.000000e+00> : vector<8xf32>
    %20 = vector.multi_reduction <add>, %19, %cst_9 [1] : vector<8x128xf32> to vector<8xf32>
    %21 = vector.shape_cast %20 : vector<8xf32> to vector<8x1xf32>
    %cst_10 = arith.constant 1.562500e-02 : f32
    %22 = vector.broadcast %cst_10 : f32 to vector<8x1xf32>
    %23 = arith.mulf %21, %22 : vector<8x1xf32>
    %cst_11 = arith.constant 9.99999974E-6 : f32
    %24 = vector.broadcast %cst_11 : f32 to vector<8x1xf32>
    %25 = arith.addf %23, %24 : vector<8x1xf32>
    %26 = math.rsqrt %25 : vector<8x1xf32>
    %27 = vector.broadcast %26 : vector<8x1xf32> to vector<8x128xf32>
    %28 = arith.mulf %13, %27 : vector<8x128xf32>
    %c0_12 = arith.constant 0 : index
    %c0_13 = arith.constant 0 : index
    %29 = vector.load %arg4[%c0_12, %c0_13] : memref<1x128xf32, #tpu.memory_space<vmem>>, vector<1x128xf32>
    %30 = vector.broadcast %29 : vector<1x128xf32> to vector<8x128xf32>
    %31 = arith.mulf %28, %30 : vector<8x128xf32>
    %c0_14 = arith.constant 0 : index
    %c0_15 = arith.constant 0 : index
    %32 = vector.load %arg5[%c0_14, %c0_15] : memref<1x128xf32, #tpu.memory_space<vmem>>, vector<1x128xf32>
    %33 = vector.broadcast %32 : vector<1x128xf32> to vector<8x128xf32>
    %34 = arith.addf %31, %33 : vector<8x128xf32>
    %c0_16 = arith.constant 0 : index
    %c0_17 = arith.constant 0 : index
    %35 = vector.load %arg6[%c0_16, %c0_17] : memref<8x128xf32, #tpu.memory_space<vmem>>, vector<8x128xf32>
    tpu.vector_store %arg6[%c0_16, %c0_17], %34 {strides = array<i32>} : memref<8x128xf32, #tpu.memory_space<vmem>>, vector<8x128xf32>,
    return
  }
  func.func @transform_0(%arg0: i32) -> (i32, i32) {
    %c0_i32 = arith.constant 0 : i32
    %c0_i32_0 = arith.constant 0 : i32
    return %arg0, %c0_i32 : i32, i32
  }
  func.func @transform_1(%arg0: i32) -> (i32, i32) {
    %c0_i32 = arith.constant 0 : i32
    %c0_i32_0 = arith.constant 0 : i32
    %c0_i32_1 = arith.constant 0 : i32
    return %c0_i32, %c0_i32_0 : i32, i32
  }
  func.func @transform_2(%arg0: i32) -> (i32, i32) {
    %c0_i32 = arith.constant 0 : i32
    %c0_i32_0 = arith.constant 0 : i32
    %c0_i32_1 = arith.constant 0 : i32
    return %c0_i32, %c0_i32_0 : i32, i32
  }
  func.func @transform_3(%arg0: i32) -> (i32, i32) {
    %c0_i32 = arith.constant 0 : i32
    %c0_i32_0 = arith.constant 0 : i32
    %c0_i32_1 = arith.constant 0 : i32
    return %c0_i32, %c0_i32_0 : i32, i32
  }
  func.func @transform_4(%arg0: i32) -> (i32, i32) {
    %c0_i32 = arith.constant 0 : i32
    %c0_i32_0 = arith.constant 0 : i32
    %c0_i32_1 = arith.constant 0 : i32
    return %c0_i32, %c0_i32_0 : i32, i32
  }
  func.func @transform_5(%arg0: i32) -> (i32, i32) {
    %c0_i32 = arith.constant 0 : i32
    %c0_i32_0 = arith.constant 0 : i32
    return %arg0, %c0_i32 : i32, i32
  }
}

</mosaic_0001>

<bundles_post_ra>
// kernel: tpu_custom_call.1
= control target key start
LH: loop header
LB: loop body
LE: loop exit
PB: predicated region body
PF: predicated region fallthrough
CT: control target
= control target key end

     0   :  { %10 = vsyncpa [#allocation3], 0  ;;  %s380_s0 = inlined_call_operand.hbm [shape: f32[8,32], index: 0, kind: input, shape index: {}]   ;;  %s381_s1 = inlined_call_operand.hbm [shape: f32[32,128], index: 1, kind: input, shape index: {}]   ;;  %s382_s2 = inlined_call_operand.vmem [shape: f32[1,128], index: 2, kind: input, shape index: {}]   ;;  %s383_s3 = inlined_call_operand.vmem [shape: f32[1,128], index: 3, kind: input, shape index: {}]   ;;  %s384_s4 = inlined_call_operand.vmem [shape: f32[1,128], index: 4, kind: input, shape index: {}]   ;;  %s385_s5 = inlined_call_operand.hbm [shape: f32[8,128], index: 5, kind: output, shape index: {}]  }
   0x1   :  { %11 = vsyncpa [#allocation6], 0 }
   0x2   :  { %12 = vsyncpa [#allocation4], 0  ;;  %s290_s18 = smov [#allocation2]   ;;  %s291_s20 = smov [#allocation5]  }
   0x3   :  { %s19_s19 = sshll.u32 %s290_s18, 4  ;;  %s28_s21 = sshll.u32 %s291_s20, 4  ;;  %s20_s19 = int_to_ptr.vmem [resolvable:$true] %s19_s19  ;;  %s328_s21 = int_to_ptr.vmem [resolvable:$true] %s28_s21 }
   0x4   :  { %s218_s24 = scalar_lea.hbm %s380_s0, 128 }
   0x5   :  { %p219_p0 = scmp.ne.s32.totalorder %s380_s0, %s218_s24  ;;  %p222_p1 = scmp.lt.u32.totalorder %s218_s24, %s380_s0 }
   0x7   :  { %p224_p2 = pnand %p222_p1, %p219_p0 }
   0x9   :  { %227 = shalt.err (!%p224_p2)
}
   0xa   :  { %s228_s29 = scalar_lea.vmem %s20_s19, 128  ;;  %p233_p4 = scmp.lt.s32.totalorder %s20_s19, %s20_s19 }
   0xb   :  { %p229_p3 = scmp.ne.s32.totalorder %s20_s19, %s228_s29  ;;  %p234_p5 = scmp.lt.s32.totalorder %s228_s29, %s228_s29 }
   0xd   :  { %p235_p6 = por %p234_p5, %p233_p4 }
   0xf   :  { %p236_p7 = pnand %p235_p6, %p229_p3 }
  0x11   :  { %239 = shalt.err (!%p236_p7)
}
  0x12   :  { %22 = dma.hbm_to_vmem [thread:$0]  %s380_s0, 128, %s20_s19, [#allocation3]  }
  0x13   :  { %s240_s9 = scalar_lea.hbm %s381_s1, 512 }
  0x14   :  { %p241_p8 = scmp.ne.s32.totalorder %s381_s1, %s240_s9  ;;  %p244_p9 = scmp.lt.u32.totalorder %s240_s9, %s381_s1 }
  0x16   :  { %p246_p10 = pnand %p244_p9, %p241_p8 }
  0x18   :  { %249 = shalt.err (!%p246_p10)
}
  0x19   :  { %s250_s14 = scalar_lea.vmem %s328_s21, 512  ;;  %p255_p12 = scmp.lt.s32.totalorder %s328_s21, %s328_s21 }
  0x1a   :  { %p251_p11 = scmp.ne.s32.totalorder %s328_s21, %s250_s14  ;;  %p256_p13 = scmp.lt.s32.totalorder %s250_s14, %s250_s14 }
  0x1c   :  { %p257_p0 = por %p256_p13, %p255_p12 }
  0x1e   :  { %p258_p1 = pnand %p257_p0, %p251_p11 }
  0x20   :  { %261 = shalt.err (!%p258_p1)
}
  0x21   :  { %s292_s0 = smov 128   ;;  %s293_s15 = smov 8  }
  0x22   :  { %34 = dma.hbm_to_vmem [thread:$0]  %s381_s1, 512, %s328_s21, [#allocation6], %s292_s0, %s292_s0, %s293_s15  }
  0x23   :  { %284 = dma.done.wait [#allocation3], 128  }
  0x24   :  { %285 = vsyncadd [#allocation3], 4294967168 }
  0x25   :  { %286 = dma.done.wait [#allocation6], 512  }
  0x26   :  { %287 = vsyncadd [#allocation6], 4294966784  ;;  %v294_v0 = vmov 0.0|0.0   ;;  %vm295_vm0 = vmmov 0   ;;  %v296_v1 = vmov 0.0   ;;  %v49_v2 = vld [vmem:[#allocation5] sm:$0xff]  ;;  %v138_v14 = vlaneseq }
  0x27   :  { %202 = vmatprep.subr.bf16.mxu0 %v294_v0  ;;  %199 = vmatprep.mubr.msk.f32.mxu0 %vm295_vm0, %v296_v1  ;;  %v50_v3 = vld [vmem:[#allocation5 + $0x8] sm:$0xff]  ;;  %v51_v4 = vld [vmem:[#allocation5 + $0x10] sm:$0xff]  ;;  %v52_v6 = vld [vmem:[#allocation5 + $0x18] sm:$0xff]  ;;  %vm60_vm1 = vcmask 261120   ;;  %s297_s22 = smov [#allocation7]  }
  0x28   :  { %v203_v5 = vpack.c.bf16 %v50_v3, %v49_v2  ;;  %v206_v7 = vpack.c.bf16 %v52_v6, %v51_v4  ;;  %v47_v8 = vld [vmem:[#allocation2] sm:$0xff]  ;;  %v139_v15 = vand.u32 127, %v138_v14  ;;  %s172_s23 = sshll.u32 %s297_s22, 4  ;;  %s173_s23 = int_to_ptr.vmem [resolvable:$true] %s172_s23 }
  0x29   :  { %v48_v9 = vmax.f32 %v47_v8, 0.0  ;;  %v182_v10 = vld [vmem:[%s382_s2] ss:$0 sm:$0xff]  ;;  %s262_s24 = scalar_lea.vmem %s173_s23, 128  ;;  %p267_p3 = scmp.lt.s32.totalorder %s173_s23, %s173_s23 }
  0x2a   :  { %204 = vmatpush3.bf16.msra.mxu0 %v203_v5  ;;  %vm140_vm2 = vcmp.lt.s32.totalorder %v139_v15, 64  ;;  %v184_v25 = vld [vmem:[%s383_s3] ss:$0 sm:$0xff]  ;;  %p263_p2 = scmp.ne.s32.totalorder %s173_s23, %s262_s24  ;;  %p268_p4 = scmp.lt.s32.totalorder %s262_s24, %s262_s24 }
  0x2b   :  { %205 = vmatprep.subr.bf16.mxu0 %v294_v0  ;;  %v185_v27 = vld [vmem:[%s384_s4] ss:$0 sm:$0xff] }
  0x2c   :  { %p269_p5 = por %p268_p4, %p267_p3 }
  0x2e   :  { %207 = vmatpush3.bf16.msra.mxu0 %v206_v7  ;;  %p270_p6 = pnand %p269_p5, %p263_p2 }
  0x31   :  { %200 = vmatmul.mubr.msk.f32.vlgmr.msra.gmra.mrb[0].mxu0 %vm60_vm1, %v48_v9 }
 0x104   :  { %v130_v11 = vpop.f32.mrb[0].mxu0 }
 0x105   :  { %v131_v12 = vadd.f32 %v182_v10, %v130_v11  ;;  %v201_v13 = vpop.f32.mrb[1].mxu0 }
 0x107   :  { %134 = vadd.xlane.f32.xlu0 %v131_v12 }
 0x194   :  { %v135_v16 = vpop.xlane.xlu0 %134 }
 0x195   :  { %v136_v17 = vmul.f32 0.015625, %v135_v16 }
 0x197   :  { %v137_v18 = vsub.f32 %v131_v12, %v136_v17 }
 0x199   :  { %v141_v19 = vsel %vm140_vm2, %v137_v18, 0.0 }
 0x19a   :  { %v142_v20 = vmul.f32 %v141_v19, %v141_v19 }
 0x19c   :  { %143 = vadd.xlane.f32.xlu0 %v142_v20 }
 0x229   :  { %v144_v21 = vpop.xlane.xlu0 %143 }
 0x22a   :  { %v145_v22 = vmul.f32 0.015625, %v144_v21 }
 0x22c   :  { %v146_v23 = vadd.f32 1e-05, %v145_v22 }
 0x22e   :  { %216 = vrsqrt.f32 %v146_v23 }
 0x238   :  { %v217_v24 = vpop.eup %216 }
 0x239   :  { %v148_v26 = vmul.f32 %v217_v24, %v137_v18 }
 0x23b   :  { %v156_v28 = vmul.f32 %v184_v25, %v148_v26 }
 0x23d   :  { %v164_v29 = vadd.f32 %v185_v27, %v156_v28 }
 0x23f   :  { %165 = vst [vmem:[#allocation7] sm:$0xff] %v164_v29 }
 0x240   :  { %273 = shalt.err (!%p270_p6)
}
 0x241   :  { %s274_s26 = scalar_lea.hbm %s385_s5, 128 }
 0x242   :  { %p275_p7 = scmp.ne.s32.totalorder %s385_s5, %s274_s26  ;;  %p278_p8 = scmp.lt.u32.totalorder %s274_s26, %s385_s5 }
 0x244   :  { %p280_p9 = pnand %p278_p8, %p275_p7 }
 0x246   :  { %283 = shalt.err (!%p280_p9)
}
 0x247   :  { %175 = dma.vmem_to_hbm [thread:$0]  %s173_s23, 128, %s385_s5, [#allocation4]  }
 0x248   :  { %288 = dma.done.wait [#allocation4], 128  }
 0x249   :  { %289 = vsyncadd [#allocation4], 4294967168 }
 0x24a   :  { %179 = vsyncpa [#allocation3], 1 }
 0x24b   :  { %180 = vsyncpa [#allocation6], 1 }
 0x24c   :  { %181 = vsyncpa [#allocation4], 1 }

</bundles_post_ra>
